<compile_context>
chip_gen: v7x
topology: tpu7x:2x2x1
jax: 0.10.0
libtpu: 0.0.40
codegen_flags: <defaults>
</compile_context>

<pallas_src>
import functools
import math

import jax
import jax.numpy as jnp
from jax.experimental import pallas as pl
from jax.experimental.pallas import tpu as pltpu


# ---------------------------------------------------------------------------
# Kernel
# ---------------------------------------------------------------------------
def _actor_kernel(s_ref, w1_ref, b1_ref, w2_ref, b2_ref, w3_ref, b3_ref,
                  o_ref, *, max_action):
    # fc1 + relu (bf16 MXU inputs, f32 accumulate, f32 elementwise)
    x = s_ref[...]
    h1 = jnp.dot(x.astype(jnp.bfloat16), w1_ref[...],
                 preferred_element_type=jnp.float32)
    h1 = jnp.maximum(h1 + b1_ref[...], 0.0)
    # fc2 + relu
    h2 = jnp.dot(h1.astype(jnp.bfloat16), w2_ref[...],
                 preferred_element_type=jnp.float32)
    h2 = jnp.maximum(h2 + b2_ref[...], 0.0)
    # fc3 + tanh + scale by max_action
    a = jnp.dot(h2.astype(jnp.bfloat16), w3_ref[...],
                preferred_element_type=jnp.float32)
    a = jnp.tanh(a + b3_ref[...]) * max_action
    o_ref[...] = a.astype(o_ref.dtype)


# ---------------------------------------------------------------------------
# Wrapper
# ---------------------------------------------------------------------------
def _round_up(x, m):
    return ((x + m - 1) // m) * m


def _pad2d(a, rows, cols):
    return jnp.pad(a, ((0, rows - a.shape[0]), (0, cols - a.shape[1])))


def actor_forward(state, params, max_action, *, tile_b=512):
    """Fused Actor forward. state: [B, state_dim] float32 -> [B, action_dim]."""
    w1, b1, w2, b2, w3, b3 = params
    B, K = state.shape
    H1 = w1.shape[1]
    H2 = w2.shape[1]
    A = w3.shape[1]

    # Lane-dense padding (last dims -> multiples of 128).
    Kp = _round_up(K, 128)
    H1p = _round_up(H1, 128)
    H2p = _round_up(H2, 128)
    Ap = _round_up(A, 128)

    # Batch tiling: large multiple of 128 by default, but never bigger than
    # the (8-aligned) batch itself so small inference batches stay one tile.
    tile_b = min(tile_b, _round_up(B, 8))
    Bp = _round_up(B, tile_b)
    num_tiles = pl.cdiv(Bp, tile_b)

    # Zero-padding is semantically safe: padded K-rows of w1 contribute 0 to
    # the dot, padded hidden columns are relu(0)=0, padded output columns and
    # padded batch rows are sliced away below.
    state_p = _pad2d(state.astype(jnp.float32), Bp, Kp)
    w1p = _pad2d(w1, Kp, H1p).astype(jnp.bfloat16)
    w2p = _pad2d(w2, H1p, H2p).astype(jnp.bfloat16)
    w3p = _pad2d(w3, H2p, Ap).astype(jnp.bfloat16)
    b1p = _pad2d(b1, 1, H1p).astype(jnp.float32)
    b2p = _pad2d(b2, 1, H2p).astype(jnp.float32)
    b3p = _pad2d(b3, 1, Ap).astype(jnp.float32)

    kernel = functools.partial(_actor_kernel, max_action=float(max_action))

    # Weights/biases: full block, constant index map -> DMA'd once, resident.
    resident = lambda arr: pl.BlockSpec(arr.shape, lambda i: (0,) * arr.ndim)

    flops = 2 * Bp * (Kp * H1p + H1p * H2p + H2p * Ap)
    transcendentals = Bp * Ap
    bytes_accessed = (state_p.size * 4
                      + (w1p.size + w2p.size + w3p.size) * 2
                      + (b1p.size + b2p.size + b3p.size) * 4
                      + Bp * Ap * 4)

    out_p = pl.pallas_call(
        kernel,
        out_shape=jax.ShapeDtypeStruct((Bp, Ap), jnp.float32),
        grid=(num_tiles,),
        in_specs=[
            pl.BlockSpec((tile_b, Kp), lambda i: (i, 0)),   # state tile
            resident(w1p), resident(b1p),
            resident(w2p), resident(b2p),
            resident(w3p), resident(b3p),
        ],
        out_specs=pl.BlockSpec((tile_b, Ap), lambda i: (i, 0)),
        compiler_params=pltpu.CompilerParams(
            dimension_semantics=("parallel",),
            vmem_limit_bytes=32 * 1024 * 1024,
        ),
        cost_estimate=pl.CostEstimate(
            flops=flops,
            transcendentals=transcendentals,
            bytes_accessed=bytes_accessed,
        ),
    )(state_p, w1p, b1p, w2p, b2p, w3p, b3p)

    return out_p[:B, :A]


# ---------------------------------------------------------------------------
# Params init (mirrors PyTorch nn.Linear default: uniform +/- 1/sqrt(fan_in)).
# Weights stored [in, out] for the row-major kernel layout.
# ---------------------------------------------------------------------------
def init_actor_params(key, state_dim, action_dim, hidden_dim=256):
    keys = jax.random.split(key, 6)

    def linear(kw, kb, fan_in, fan_out):
        bound = 1.0 / math.sqrt(fan_in)
        w = jax.random.uniform(kw, (fan_in, fan_out), jnp.float32, -bound, bound)
        b = jax.random.uniform(kb, (1, fan_out), jnp.float32, -bound, bound)
        return w, b

    w1, b1 = linear(keys[0], keys[1], state_dim, hidden_dim)
    w2, b2 = linear(keys[2], keys[3], hidden_dim, hidden_dim)
    w3, b3 = linear(keys[4], keys[5], hidden_dim, action_dim)
    return (w1, b1, w2, b2, w3, b3)


def actor_reference(state, params, max_action, match_kernel_precision=True):
    """Pure-JAX reference. With match_kernel_precision, mimics the kernel's
    bf16-input / f32-accumulate matmuls for a tight correctness check."""
    w1, b1, w2, b2, w3, b3 = params
    if match_kernel_precision:
        dot = lambda a, b: jnp.dot(a.astype(jnp.bfloat16), b.astype(jnp.bfloat16),
                                   preferred_element_type=jnp.float32)
    else:
        dot = lambda a, b: a @ b
    x = jnp.maximum(dot(state, w1) + b1, 0.0)
    x = jnp.maximum(dot(x, w2) + b2, 0.0)
    return jnp.tanh(dot(x, w3) + b3) * max_action


if __name__ == "__main__":
    key = jax.random.PRNGKey(0)
    k_param, k_s1, k_s2 = jax.random.split(key, 3)

    state_dim = 16
    action_dim = 4
    hidden_dim = 256
    max_action = 2.0

    params = init_actor_params(k_param, state_dim, action_dim, hidden_dim)

    # Small interactive-size batch (single grid step).
    state_small = jax.random.normal(k_s1, (8, state_dim), jnp.float32)
    out_small = jax.block_until_ready(actor_forward(state_small, params, max_action))
    ref_small = actor_reference(state_small, params, max_action)
    assert out_small.shape == (8, action_dim)
    assert jnp.allclose(out_small, ref_small, atol=1e-3, rtol=1e-3)
    assert bool(jnp.all(jnp.abs(out_small) <= max_action + 1e-5))

    # Larger, non-tile-aligned batch: exercises batch padding + multi-step grid.
    state_large = jax.random.normal(k_s2, (600, state_dim), jnp.float32)
    out_large = jax.block_until_ready(actor_forward(state_large, params, max_action))
    ref_large = actor_reference(state_large, params, max_action)
    assert out_large.shape == (600, action_dim)
    assert jnp.allclose(out_large, ref_large, atol=1e-3, rtol=1e-3)

    print("KERNEL_OK")
</pallas_src>

<mosaic_0001>
module attributes {stable_mosaic.version = 11 : i64} {
  func.func @_actor_kernel(%arg0: i32, %arg1: memref<8x128xf32, #tpu.memory_space<vmem>>, %arg2: memref<128x256xbf16, #tpu.memory_space<vmem>>, %arg3: memref<1x256xf32, #tpu.memory_space<vmem>>, %arg4: memref<256x256xbf16, #tpu.memory_space<vmem>>, %arg5: memref<1x256xf32, #tpu.memory_space<vmem>>, %arg6: memref<256x128xbf16, #tpu.memory_space<vmem>>, %arg7: memref<1x128xf32, #tpu.memory_space<vmem>>, %arg8: memref<8x128xf32, #tpu.memory_space<vmem>>) attributes {dimension_semantics = [#tpu.dimension_semantics<parallel>], iteration_bounds = array<i64: 1>, scalar_prefetch = 0 : i64, scratch_operands = 0 : i64, tpu.core_type = #tpu.core_type<tc>, window_params = [{transform_indices = @transform_0, window_bounds = array<i64: 8, 128>}, {pipeline_mode = #tpu.pipeline_mode<synchronous>, transform_indices = @transform_1, window_bounds = array<i64: 128, 256>}, {pipeline_mode = #tpu.pipeline_mode<synchronous>, transform_indices = @transform_2, window_bounds = array<i64: 1, 256>}, {pipeline_mode = #tpu.pipeline_mode<synchronous>, transform_indices = @transform_3, window_bounds = array<i64: 256, 256>}, {pipeline_mode = #tpu.pipeline_mode<synchronous>, transform_indices = @transform_4, window_bounds = array<i64: 1, 256>}, {pipeline_mode = #tpu.pipeline_mode<synchronous>, transform_indices = @transform_5, window_bounds = array<i64: 256, 128>}, {pipeline_mode = #tpu.pipeline_mode<synchronous>, transform_indices = @transform_6, window_bounds = array<i64: 1, 128>}, {transform_indices = @transform_7, window_bounds = array<i64: 8, 128>}]} {
    %c0 = arith.constant 0 : index
    %c0_0 = arith.constant 0 : index
    %0 = vector.load %arg1[%c0, %c0_0] : memref<8x128xf32, #tpu.memory_space<vmem>>, vector<8x128xf32>
    %1 = arith.truncf %0 : vector<8x128xf32> to vector<8x128xbf16>
    %c0_1 = arith.constant 0 : index
    %c0_2 = arith.constant 0 : index
    %2 = vector.load %arg2[%c0_1, %c0_2] : memref<128x256xbf16, #tpu.memory_space<vmem>>, vector<128x256xbf16>
    %cst = arith.constant dense<0.000000e+00> : vector<8x256xf32>
    %3 = tpu.matmul %1, %2, %cst {dimension_numbers = #tpu.dot_dimension_numbers<[1], [0], [0], [1], [0, 0, 1, 1], [], []>} : vector<8x128xbf16>, vector<128x256xbf16>, vector<8x256xf32> -> vector<8x256xf32>
    %c0_3 = arith.constant 0 : index
    %c0_4 = arith.constant 0 : index
    %4 = vector.load %arg3[%c0_3, %c0_4] : memref<1x256xf32, #tpu.memory_space<vmem>>, vector<1x256xf32>
    %5 = vector.broadcast %4 : vector<1x256xf32> to vector<8x256xf32>
    %6 = arith.addf %3, %5 : vector<8x256xf32>
    %cst_5 = arith.constant 0.000000e+00 : f32
    %7 = vector.broadcast %cst_5 : f32 to vector<8x256xf32>
    %8 = arith.maximumf %6, %7 : vector<8x256xf32>
    %9 = arith.truncf %8 : vector<8x256xf32> to vector<8x256xbf16>
    %c0_6 = arith.constant 0 : index
    %c0_7 = arith.constant 0 : index
    %10 = vector.load %arg4[%c0_6, %c0_7] : memref<256x256xbf16, #tpu.memory_space<vmem>>, vector<256x256xbf16>
    %cst_8 = arith.constant dense<0.000000e+00> : vector<8x256xf32>
    %11 = tpu.matmul %9, %10, %cst_8 {dimension_numbers = #tpu.dot_dimension_numbers<[1], [0], [0], [1], [0, 0, 1, 1], [], []>} : vector<8x256xbf16>, vector<256x256xbf16>, vector<8x256xf32> -> vector<8x256xf32>
    %c0_9 = arith.constant 0 : index
    %c0_10 = arith.constant 0 : index
    %12 = vector.load %arg5[%c0_9, %c0_10] : memref<1x256xf32, #tpu.memory_space<vmem>>, vector<1x256xf32>
    %13 = vector.broadcast %12 : vector<1x256xf32> to vector<8x256xf32>
    %14 = arith.addf %11, %13 : vector<8x256xf32>
    %cst_11 = arith.constant 0.000000e+00 : f32
    %15 = vector.broadcast %cst_11 : f32 to vector<8x256xf32>
    %16 = arith.maximumf %14, %15 : vector<8x256xf32>
    %17 = arith.truncf %16 : vector<8x256xf32> to vector<8x256xbf16>
    %c0_12 = arith.constant 0 : index
    %c0_13 = arith.constant 0 : index
    %18 = vector.load %arg6[%c0_12, %c0_13] : memref<256x128xbf16, #tpu.memory_space<vmem>>, vector<256x128xbf16>
    %cst_14 = arith.constant dense<0.000000e+00> : vector<8x128xf32>
    %19 = tpu.matmul %17, %18, %cst_14 {dimension_numbers = #tpu.dot_dimension_numbers<[1], [0], [0], [1], [0, 0, 1, 1], [], []>} : vector<8x256xbf16>, vector<256x128xbf16>, vector<8x128xf32> -> vector<8x128xf32>
    %c0_15 = arith.constant 0 : index
    %c0_16 = arith.constant 0 : index
    %20 = vector.load %arg7[%c0_15, %c0_16] : memref<1x128xf32, #tpu.memory_space<vmem>>, vector<1x128xf32>
    %21 = vector.broadcast %20 : vector<1x128xf32> to vector<8x128xf32>
    %22 = arith.addf %19, %21 : vector<8x128xf32>
    %23 = math.tanh %22 : vector<8x128xf32>
    %cst_17 = arith.constant 2.000000e+00 : f32
    %24 = vector.broadcast %cst_17 : f32 to vector<8x128xf32>
    %25 = arith.mulf %23, %24 : vector<8x128xf32>
    %c0_18 = arith.constant 0 : index
    %c0_19 = arith.constant 0 : index
    %26 = vector.load %arg8[%c0_18, %c0_19] : memref<8x128xf32, #tpu.memory_space<vmem>>, vector<8x128xf32>
    tpu.vector_store %arg8[%c0_18, %c0_19], %25 {strides = array<i32>} : memref<8x128xf32, #tpu.memory_space<vmem>>, vector<8x128xf32>,
    return
  }
  func.func @transform_0(%arg0: i32) -> (i32, i32) {
    %c0_i32 = arith.constant 0 : i32
    %c0_i32_0 = arith.constant 0 : i32
    return %arg0, %c0_i32 : i32, i32
  }
  func.func @transform_1(%arg0: i32) -> (i32, i32) {
    %c0_i32 = arith.constant 0 : i32
    %c0_i32_0 = arith.constant 0 : i32
    %c0_i32_1 = arith.constant 0 : i32
    return %c0_i32, %c0_i32_0 : i32, i32
  }
  func.func @transform_2(%arg0: i32) -> (i32, i32) {
    %c0_i32 = arith.constant 0 : i32
    %c0_i32_0 = arith.constant 0 : i32
    %c0_i32_1 = arith.constant 0 : i32
    return %c0_i32, %c0_i32_0 : i32, i32
  }
  func.func @transform_3(%arg0: i32) -> (i32, i32) {
    %c0_i32 = arith.constant 0 : i32
    %c0_i32_0 = arith.constant 0 : i32
    %c0_i32_1 = arith.constant 0 : i32
    return %c0_i32, %c0_i32_0 : i32, i32
  }
  func.func @transform_4(%arg0: i32) -> (i32, i32) {
    %c0_i32 = arith.constant 0 : i32
    %c0_i32_0 = arith.constant 0 : i32
    %c0_i32_1 = arith.constant 0 : i32
    return %c0_i32, %c0_i32_0 : i32, i32
  }
  func.func @transform_5(%arg0: i32) -> (i32, i32) {
    %c0_i32 = arith.constant 0 : i32
    %c0_i32_0 = arith.constant 0 : i32
    %c0_i32_1 = arith.constant 0 : i32
    return %c0_i32, %c0_i32_0 : i32, i32
  }
  func.func @transform_6(%arg0: i32) -> (i32, i32) {
    %c0_i32 = arith.constant 0 : i32
    %c0_i32_0 = arith.constant 0 : i32
    %c0_i32_1 = arith.constant 0 : i32
    return %c0_i32, %c0_i32_0 : i32, i32
  }
  func.func @transform_7(%arg0: i32) -> (i32, i32) {
    %c0_i32 = arith.constant 0 : i32
    %c0_i32_0 = arith.constant 0 : i32
    return %arg0, %c0_i32 : i32, i32
  }
}

</mosaic_0001>

<bundles_post_ra>
// kernel: tpu_custom_call.1
= control target key start
LH: loop header
LB: loop body
LE: loop exit
PB: predicated region body
PF: predicated region fallthrough
CT: control target
= control target key end

     0   :  { %12 = vsyncpa [#allocation3], 0  ;;  %s1110_s0 = inlined_call_operand.hbm [shape: f32[8,128], index: 0, kind: input, shape index: {}]   ;;  %s1111_s1 = inlined_call_operand.hbm [shape: bf16[128,256], index: 1, kind: input, shape index: {}]   ;;  %s1112_s2 = inlined_call_operand.vmem [shape: f32[1,256], index: 2, kind: input, shape index: {}]   ;;  %s1113_s3 = inlined_call_operand.hbm [shape: bf16[256,256], index: 3, kind: input, shape index: {}]   ;;  %s1114_s4 = inlined_call_operand.vmem [shape: f32[1,256], index: 4, kind: input, shape index: {}]   ;;  %s1115_s5 = inlined_call_operand.hbm [shape: bf16[256,128], index: 5, kind: input, shape index: {}]   ;;  %s1116_s6 = inlined_call_operand.vmem [shape: f32[1,128], index: 6, kind: input, shape index: {}]   ;;  %s1117_s7 = inlined_call_operand.hbm [shape: f32[8,128], index: 7, kind: output, shape index: {}]  }
   0x1   :  { %13 = vsyncpa [#allocation6], 0 }
   0x2   :  { %14 = vsyncpa [#allocation9], 0 }
   0x3   :  { %15 = vsyncpa [#allocation4], 0  ;;  %s985_s24 = smov [#allocation5]   ;;  %s867_s28 = scalar_lea.hbm %s1111_s1, 2048 }
   0x4   :  { %s31_s25 = sshll.u32 %s985_s24, 4  ;;  %p868_p0 = scmp.ne.s32.totalorder %s1111_s1, %s867_s28  ;;  %s32_s25 = int_to_ptr.vmem [resolvable:$true] %s31_s25 }
   0x5   :  { %p871_p1 = scmp.lt.u32.totalorder %s867_s28, %s1111_s1 }
   0x7   :  { %p873_p2 = pnand %p871_p1, %p868_p0 }
   0x9   :  { %876 = shalt.err (!%p873_p2)
}
   0xa   :  { %s877_s10 = scalar_lea.vmem %s32_s25, 2048  ;;  %p882_p4 = scmp.lt.s32.totalorder %s32_s25, %s32_s25 }
   0xb   :  { %p878_p3 = scmp.ne.s32.totalorder %s32_s25, %s877_s10  ;;  %p883_p5 = scmp.lt.s32.totalorder %s877_s10, %s877_s10 }
   0xd   :  { %p884_p6 = por %p883_p5, %p882_p4 }
   0xf   :  { %p885_p7 = pnand %p884_p6, %p878_p3 }
  0x11   :  { %888 = shalt.err (!%p885_p7)
}
  0x12   :  { %s986_s11 = smov 128   ;;  %s987_s12 = smov 8  }
  0x13   :  { %37 = dma.hbm_to_vmem [thread:$0]  %s1111_s1, 2048, %s32_s25, [#allocation6], %s986_s11, %s986_s11, %s987_s12  }
  0x14   :  { %s988_s15 = smov [#allocation2]   ;;  %s989_s17 = smov [#allocation7]  }
  0x15   :  { %s22_s16 = sshll.u32 %s988_s15, 4  ;;  %s45_s18 = sshll.u32 %s989_s17, 4  ;;  %s23_s16 = int_to_ptr.vmem [resolvable:$true] %s22_s16  ;;  %s46_s18 = int_to_ptr.vmem [resolvable:$true] %s45_s18 }
  0x16   :  { %s889_s21 = scalar_lea.hbm %s1110_s0, 128 }
  0x17   :  { %p890_p8 = scmp.ne.s32.totalorder %s1110_s0, %s889_s21  ;;  %p893_p9 = scmp.lt.u32.totalorder %s889_s21, %s1110_s0 }
  0x19   :  { %p895_p10 = pnand %p893_p9, %p890_p8 }
  0x1b   :  { %898 = shalt.err (!%p895_p10)
}
  0x1c   :  { %s899_s1 = scalar_lea.vmem %s23_s16, 128  ;;  %p904_p12 = scmp.lt.s32.totalorder %s23_s16, %s23_s16 }
  0x1d   :  { %p900_p11 = scmp.ne.s32.totalorder %s23_s16, %s899_s1  ;;  %p905_p13 = scmp.lt.s32.totalorder %s899_s1, %s899_s1 }
  0x1f   :  { %p906_p0 = por %p905_p13, %p904_p12 }
  0x21   :  { %p907_p1 = pnand %p906_p0, %p900_p11 }
  0x23   :  { %910 = shalt.err (!%p907_p1)
}
  0x24   :  { %25 = dma.hbm_to_vmem [thread:$0]  %s1110_s0, 128, %s23_s16, [#allocation3]  }
  0x25   :  { %s911_s30 = scalar_lea.hbm %s1113_s3, 4096 }
  0x26   :  { %p912_p2 = scmp.ne.s32.totalorder %s1113_s3, %s911_s30  ;;  %p915_p3 = scmp.lt.u32.totalorder %s911_s30, %s1113_s3 }
  0x28   :  { %p917_p4 = pnand %p915_p3, %p912_p2 }
  0x2a   :  { %920 = shalt.err (!%p917_p4)
}
  0x2b   :  { %s921_s14 = scalar_lea.vmem %s46_s18, 4096  ;;  %p926_p6 = scmp.lt.s32.totalorder %s46_s18, %s46_s18 }
  0x2c   :  { %p922_p5 = scmp.ne.s32.totalorder %s46_s18, %s921_s14  ;;  %p927_p7 = scmp.lt.s32.totalorder %s921_s14, %s921_s14 }
  0x2e   :  { %p928_p8 = por %p927_p7, %p926_p6 }
  0x30   :  { %p929_p9 = pnand %p928_p8, %p922_p5 }
  0x32   :  { %932 = shalt.err (!%p929_p9)
}
  0x33   :  { %51 = dma.hbm_to_vmem [thread:$0]  %s1113_s3, 4096, %s46_s18, [#allocation6], %s986_s11, %s986_s11, %s987_s12  }
  0x34   :  { %s990_s16 = smov [#allocation8]   ;;  %s933_s21 = scalar_lea.hbm %s1115_s5, 2048 }
  0x35   :  { %s59_s17 = sshll.u32 %s990_s16, 4  ;;  %p934_p10 = scmp.ne.s32.totalorder %s1115_s5, %s933_s21  ;;  %s60_s17 = int_to_ptr.vmem [resolvable:$true] %s59_s17 }
  0x36   :  { %p937_p11 = scmp.lt.u32.totalorder %s933_s21, %s1115_s5 }
  0x38   :  { %p939_p12 = pnand %p937_p11, %p934_p10 }
  0x3a   :  { %942 = shalt.err (!%p939_p12)
}
  0x3b   :  { %s943_s1 = scalar_lea.vmem %s60_s17, 2048  ;;  %p948_p0 = scmp.lt.s32.totalorder %s60_s17, %s60_s17 }
  0x3c   :  { %p944_p13 = scmp.ne.s32.totalorder %s60_s17, %s943_s1  ;;  %p949_p1 = scmp.lt.s32.totalorder %s943_s1, %s943_s1 }
  0x3e   :  { %p950_p2 = por %p949_p1, %p948_p0 }
  0x40   :  { %p951_p3 = pnand %p950_p2, %p944_p13 }
  0x42   :  { %954 = shalt.err (!%p951_p3)
}
  0x43   :  { %s991_s3 = smov 64   ;;  %s992_s11 = smov 4  }
  0x44   :  { %65 = dma.hbm_to_vmem [thread:$0]  %s1115_s5, 2048, %s60_s17, [#allocation9], %s991_s3, %s991_s3, %s992_s11  }
  0x45   :  { %977 = dma.done.wait [#allocation3], 128  }
  0x46   :  { %978 = vsyncadd [#allocation3], 4294967168 }
  0x47   :  { %979 = dma.done.wait [#allocation6], 6144  }
  0x48   :  { %980 = vsyncadd [#allocation6], 4294961152 }
  0x49   :  { %981 = dma.done.wait [#allocation9], 2048  }
  0x4a   :  { %982 = vsyncadd [#allocation9], 4294965248  ;;  %v993_v0 = vmov 0   ;;  %v777_v1 = vld [vmem:[#allocation5 + $0x4] ss:$8 sps:$4 sm:$0xff]   ;;  %v81_v26 = vld [vmem:[#allocation2] sm:$0xff]  ;;  %v101_v63 = vlaneseq }
  0x4b   :  { %223 = vmatprep.mubr.bf16.mxu0 %v993_v0  ;;  %v779_v2 = vld [vmem:[#allocation5] ss:$8 sps:$4 sm:$0xff]   ;;  %191 = vmatprep.subr.bf16.mxu0 %v777_v1  ;;  %v780_v3 = vld [vmem:[#allocation5 + $0x14] ss:$8 sps:$4 sm:$0xff]   ;;  %v782_v4 = vld [vmem:[#allocation5 + $0x10] ss:$8 sps:$4 sm:$0xff]   ;;  %v82_v31 = vpack.c.bf16 %v81_v26, %v81_v26 }
  0x4c   :  { %192 = vmatpush1.bf16.msra.mxu0 %v779_v2  ;;  %v783_v5 = vld [vmem:[#allocation5 + $0x24] ss:$8 sps:$4 sm:$0xff]   ;;  %v785_v6 = vld [vmem:[#allocation5 + $0x20] ss:$8 sps:$4 sm:$0xff]   ;;  %v786_v7 = vld [vmem:[#allocation5 + $0x34] ss:$8 sps:$4 sm:$0xff]  }
  0x4d   :  { %193 = vmatprep.subr.bf16.mxu0 %v780_v3  ;;  %v788_v8 = vld [vmem:[#allocation5 + $0x30] ss:$8 sps:$4 sm:$0xff]   ;;  %v789_v9 = vld [vmem:[#allocation5 + $0x44] ss:$8 sps:$4 sm:$0xff]   ;;  %v803_v11 = vld [vmem:[#allocation7] ss:$8 sps:$4 sm:$0xff]  }
  0x4e   :  { %v801_v10 = vld [vmem:[#allocation7 + $0x4] ss:$8 sps:$4 sm:$0xff]   ;;  %v804_v12 = vld [vmem:[#allocation7 + $0x14] ss:$8 sps:$4 sm:$0xff]   ;;  %v791_v13 = vld [vmem:[#allocation5 + $0x40] ss:$8 sps:$4 sm:$0xff]  }
  0x4f   :  { %440 = vmatprep.subr.bf16.mxu1 %v801_v10  ;;  %v806_v14 = vld [vmem:[#allocation7 + $0x10] ss:$8 sps:$4 sm:$0xff]   ;;  %v807_v15 = vld [vmem:[#allocation7 + $0x24] ss:$8 sps:$4 sm:$0xff]   ;;  %v792_v16 = vld [vmem:[#allocation5 + $0x54] ss:$8 sps:$4 sm:$0xff]  }
  0x50   :  { %194 = vmatpush1.bf16.msra.mxu0 %v782_v4  ;;  %441 = vmatpush1.bf16.msra.mxu1 %v803_v11  ;;  %v794_v17 = vld [vmem:[#allocation5 + $0x50] ss:$8 sps:$4 sm:$0xff]   ;;  %v809_v18 = vld [vmem:[#allocation7 + $0x20] ss:$8 sps:$4 sm:$0xff]   ;;  %v810_v19 = vld [vmem:[#allocation7 + $0x34] ss:$8 sps:$4 sm:$0xff]  }
  0x51   :  { %195 = vmatprep.subr.bf16.mxu0 %v783_v5  ;;  %442 = vmatprep.subr.bf16.mxu1 %v804_v12  ;;  %v795_v20 = vld [vmem:[#allocation5 + $0x64] ss:$8 sps:$4 sm:$0xff]   ;;  %v797_v21 = vld [vmem:[#allocation5 + $0x60] ss:$8 sps:$4 sm:$0xff]   ;;  %v812_v22 = vld [vmem:[#allocation7 + $0x30] ss:$8 sps:$4 sm:$0xff]  }
  0x52   :  { %v813_v23 = vld [vmem:[#allocation7 + $0x44] ss:$8 sps:$4 sm:$0xff]   ;;  %v798_v24 = vld [vmem:[#allocation5 + $0x74] ss:$8 sps:$4 sm:$0xff]   ;;  %v800_v25 = vld [vmem:[#allocation5 + $0x70] ss:$8 sps:$4 sm:$0xff]  }
  0x53   :  { %v815_v27 = vld [vmem:[#allocation7 + $0x40] ss:$8 sps:$4 sm:$0xff]   ;;  %v816_v28 = vld [vmem:[#allocation7 + $0x54] ss:$8 sps:$4 sm:$0xff]   ;;  %v818_v29 = vld [vmem:[#allocation7 + $0x50] ss:$8 sps:$4 sm:$0xff]  }
  0x54   :  { %196 = vmatpush1.bf16.msra.mxu0 %v785_v6  ;;  %443 = vmatpush1.bf16.msra.mxu1 %v806_v14  ;;  %v819_v30 = vld [vmem:[#allocation7 + $0x64] ss:$8 sps:$4 sm:$0xff]   ;;  %v821_v32 = vld [vmem:[#allocation7 + $0x60] ss:$8 sps:$4 sm:$0xff]   ;;  %v822_v33 = vld [vmem:[#allocation7 + $0x74] ss:$8 sps:$4 sm:$0xff]  }
  0x55   :  { %197 = vmatprep.subr.bf16.mxu0 %v786_v7  ;;  %444 = vmatprep.subr.bf16.mxu1 %v807_v15  ;;  %v824_v34 = vld [vmem:[#allocation7 + $0x70] ss:$8 sps:$4 sm:$0xff]   ;;  %v825_v35 = vld [vmem:[#allocation7 + $0x84] ss:$8 sps:$4 sm:$0xff]   ;;  %v827_v36 = vld [vmem:[#allocation7 + $0x80] ss:$8 sps:$4 sm:$0xff]  }
  0x56   :  { %v828_v37 = vld [vmem:[#allocation7 + $0x94] ss:$8 sps:$4 sm:$0xff]   ;;  %v830_v38 = vld [vmem:[#allocation7 + $0x90] ss:$8 sps:$4 sm:$0xff]   ;;  %v831_v39 = vld [vmem:[#allocation7 + $0xa4] ss:$8 sps:$4 sm:$0xff]  }
  0x57   :  { %v833_v40 = vld [vmem:[#allocation7 + $0xa0] ss:$8 sps:$4 sm:$0xff]   ;;  %v834_v41 = vld [vmem:[#allocation7 + $0xb4] ss:$8 sps:$4 sm:$0xff]   ;;  %v836_v42 = vld [vmem:[#allocation7 + $0xb0] ss:$8 sps:$4 sm:$0xff]  }
  0x58   :  { %198 = vmatpush1.bf16.msra.mxu0 %v788_v8  ;;  %445 = vmatpush1.bf16.msra.mxu1 %v809_v18  ;;  %v837_v43 = vld [vmem:[#allocation7 + $0xc4] ss:$8 sps:$4 sm:$0xff]   ;;  %v839_v44 = vld [vmem:[#allocation7 + $0xc0] ss:$8 sps:$4 sm:$0xff]   ;;  %v840_v45 = vld [vmem:[#allocation7 + $0xd4] ss:$8 sps:$4 sm:$0xff]  }
  0x59   :  { %199 = vmatprep.subr.bf16.mxu0 %v789_v9  ;;  %446 = vmatprep.subr.bf16.mxu1 %v810_v19  ;;  %v842_v46 = vld [vmem:[#allocation7 + $0xd0] ss:$8 sps:$4 sm:$0xff]   ;;  %v843_v47 = vld [vmem:[#allocation7 + $0xe4] ss:$8 sps:$4 sm:$0xff]   ;;  %v845_v48 = vld [vmem:[#allocation7 + $0xe0] ss:$8 sps:$4 sm:$0xff]  }
  0x5a   :  { %v846_v49 = vld [vmem:[#allocation7 + $0xf4] ss:$8 sps:$4 sm:$0xff]   ;;  %v848_v50 = vld [vmem:[#allocation7 + $0xf0] ss:$8 sps:$4 sm:$0xff]   ;;  %v849_v51 = vld [vmem:[#allocation8 + $0x40] sm:$0xff]   ;;  %v102_v0 = vshrl.u32 %v101_v63, 7 }
  0x5b   :  { %v850_v52 = vld [vmem:[#allocation8] sm:$0xff]   ;;  %v851_v53 = vld [vmem:[#allocation8 + $0x48] sm:$0xff]   ;;  %v853_v55 = vld [vmem:[#allocation8 + $0x50] sm:$0xff]  }
  0x5c   :  { %200 = vmatpush1.bf16.msra.mxu0 %v791_v13  ;;  %447 = vmatpush1.bf16.msra.mxu1 %v812_v22  ;;  %v852_v54 = vld [vmem:[#allocation8 + $0x8] sm:$0xff]   ;;  %v854_v56 = vld [vmem:[#allocation8 + $0x10] sm:$0xff]   ;;  %v855_v57 = vld [vmem:[#allocation8 + $0x58] sm:$0xff]   ;;  %v103_v1 = vsub.s32 0, %v102_v0  ;;  %v107_v3 = vsub.s32 1, %v102_v0 }
  0x5d   :  { %201 = vmatprep.subr.bf16.mxu0 %v792_v16  ;;  %448 = vmatprep.subr.bf16.mxu1 %v813_v23  ;;  %v856_v58 = vld [vmem:[#allocation8 + $0x18] sm:$0xff]   ;;  %v857_v59 = vld [vmem:[#allocation8 + $0x60] sm:$0xff]   ;;  %v859_v61 = vld [vmem:[#allocation8 + $0x68] sm:$0xff]  }
  0x5e   :  { %v858_v60 = vld [vmem:[#allocation8 + $0x20] sm:$0xff]   ;;  %v860_v62 = vld [vmem:[#allocation8 + $0x28] sm:$0xff]   ;;  %v99_v2 = vld [vmem:[%s1112_s2] sm:$0x3] }
  0x5f   :  { %v104_v4 = vrot.slane %v99_v2, %v103_v1  ;;  %v108_v5 = vrot.slane %v99_v2, %v107_v3  ;;  %v861_v16 = vld [vmem:[#allocation8 + $0x70] sm:$0xff]   ;;  %v863_v18 = vld [vmem:[#allocation8 + $0x78] sm:$0xff]  }
  0x60   :  { %202 = vmatpush1.bf16.msra.mxu0 %v794_v17  ;;  %449 = vmatpush1.bf16.msra.mxu1 %v815_v27  ;;  %v862_v17 = vld [vmem:[#allocation8 + $0x30] sm:$0xff]   ;;  %v864_v19 = vld [vmem:[#allocation8 + $0x38] sm:$0xff]  }
  0x61   :  { %203 = vmatprep.subr.bf16.mxu0 %v795_v20  ;;  %450 = vmatprep.subr.bf16.mxu1 %v816_v28  ;;  %v268_v20 = vld [vmem:[%s1114_s4] sm:$0x3]  ;;  %s994_s4 = smov [#allocation10]  }
  0x62   :  { %v277_v22 = vrot.slane %v268_v20, %v107_v3  ;;  %s669_s30 = sshll.u32 %s994_s4, 4  ;;  %s670_s30 = int_to_ptr.vmem [resolvable:$true] %s669_s30 }
  0x63   :  { %s955_s8 = scalar_lea.vmem %s670_s30, 128  ;;  %p960_p5 = scmp.lt.s32.totalorder %s670_s30, %s670_s30 }
  0x64   :  { %204 = vmatpush1.bf16.msra.mxu0 %v797_v21  ;;  %451 = vmatpush1.bf16.msra.mxu1 %v818_v29  ;;  %v273_v21 = vrot.slane %v268_v20, %v103_v1  ;;  %p956_p4 = scmp.ne.s32.totalorder %s670_s30, %s955_s8  ;;  %p961_p6 = scmp.lt.s32.totalorder %s955_s8, %s955_s8 }
  0x65   :  { %205 = vmatprep.subr.bf16.mxu0 %v798_v24  ;;  %452 = vmatprep.subr.bf16.mxu1 %v819_v30 }
  0x66   :  { %p962_p7 = por %p961_p6, %p960_p5 }
  0x68   :  { %206 = vmatpush1.bf16.msra.mxu0 %v800_v25  ;;  %453 = vmatpush1.bf16.msra.mxu1 %v821_v32  ;;  %p963_p8 = pnand %p962_p7, %p956_p4 }
  0x69   :  { %454 = vmatprep.subr.bf16.mxu1 %v822_v33  ;;  %745 = vmatprep.subr.bf16.mxu0 %v849_v51 }
  0x6b   :  { %224 = vmatmul.mubr.bf16.vlgmr.msra.gmra.mrb[0].mxu0 %v82_v31 }
  0x6c   :  { %455 = vmatpush1.bf16.msra.mxu1 %v824_v34  ;;  %746 = vmatpush3.bf16.msra.mxu0 %v850_v52  ;;  %v728_v34 = vld [vmem:[%s1116_s6] ss:$0 sm:$0xff] }
  0x6d   :  { %456 = vmatprep.subr.bf16.mxu1 %v825_v35  ;;  %747 = vmatprep.subr.bf16.mxu0 %v851_v53 }
  0x70   :  { %457 = vmatpush1.bf16.msra.mxu1 %v827_v36  ;;  %748 = vmatpush3.bf16.msra.mxu0 %v852_v54 }
  0x71   :  { %458 = vmatprep.subr.bf16.mxu1 %v828_v37  ;;  %749 = vmatprep.subr.bf16.mxu0 %v853_v55 }
  0x74   :  { %459 = vmatpush1.bf16.msra.mxu1 %v830_v38  ;;  %750 = vmatpush3.bf16.msra.mxu0 %v854_v56 }
  0x75   :  { %460 = vmatprep.subr.bf16.mxu1 %v831_v39  ;;  %751 = vmatprep.subr.bf16.mxu0 %v855_v57 }
  0x78   :  { %461 = vmatpush1.bf16.msra.mxu1 %v833_v40  ;;  %752 = vmatpush3.bf16.msra.mxu0 %v856_v58 }
  0x79   :  { %462 = vmatprep.subr.bf16.mxu1 %v834_v41  ;;  %753 = vmatprep.subr.bf16.mxu0 %v857_v59 }
  0x7c   :  { %463 = vmatpush1.bf16.msra.mxu1 %v836_v42  ;;  %754 = vmatpush3.bf16.msra.mxu0 %v858_v60 }
  0x7d   :  { %464 = vmatprep.subr.bf16.mxu1 %v837_v43  ;;  %755 = vmatprep.subr.bf16.mxu0 %v859_v61 }
  0x80   :  { %465 = vmatpush1.bf16.msra.mxu1 %v839_v44  ;;  %756 = vmatpush3.bf16.msra.mxu0 %v860_v62 }
  0x81   :  { %466 = vmatprep.subr.bf16.mxu1 %v840_v45  ;;  %757 = vmatprep.subr.bf16.mxu0 %v861_v16 }
  0x84   :  { %467 = vmatpush1.bf16.msra.mxu1 %v842_v46  ;;  %758 = vmatpush3.bf16.msra.mxu0 %v862_v17 }
  0x85   :  { %468 = vmatprep.subr.bf16.mxu1 %v843_v47  ;;  %759 = vmatprep.subr.bf16.mxu0 %v863_v18 }
  0x88   :  { %469 = vmatpush1.bf16.msra.mxu1 %v845_v48  ;;  %760 = vmatpush3.bf16.msra.mxu0 %v864_v19 }
  0x89   :  { %470 = vmatprep.subr.bf16.mxu1 %v846_v49 }
  0x8c   :  { %471 = vmatpush1.bf16.msra.mxu1 %v848_v50 }
 0x13e   :  { %v225_v6 = vpop.f32.mrb[0].mxu0 }
 0x13f   :  { %v226_v7 = vadd.f32 %v225_v6, %v104_v4  ;;  %v227_v8 = vpop.f32.mrb[1].mxu0 }
 0x140   :  { %v228_v9 = vadd.f32 %v227_v8, %v108_v5  ;;  %v229_v10 = vpop.f32.mrb[2].mxu0 }
 0x141   :  { %v232_v11 = vmax.f32 %v226_v7, 0.0  ;;  %v230_v12 = vpop.f32.mrb[3].mxu0 }
 0x142   :  { %v233_v13 = vmax.f32 %v228_v9, 0.0 }
 0x143   :  { %v234_v15 = vpack.c.bf16 %v232_v11, %v232_v11 }
 0x144   :  { %v235_v14 = vpack.c.bf16 %v233_v13, %v233_v13 }
 0x146   :  { %472 = vmatprep.mubr.bf16.mxu1 %v235_v14 }
 0x147   :  { %473 = vmatmul.mubr.bf16.vlgmr.msra.gmra.mrb[0].mxu1 %v234_v15 }
 0x21a   :  { %v474_v23 = vpop.f32.mrb[0].mxu1 }
 0x21b   :  { %v475_v24 = vadd.f32 %v474_v23, %v273_v21  ;;  %v476_v25 = vpop.f32.mrb[1].mxu1 }
 0x21c   :  { %v477_v26 = vadd.f32 %v476_v25, %v277_v22  ;;  %v478_v27 = vpop.f32.mrb[2].mxu1 }
 0x21d   :  { %v481_v28 = vmax.f32 %v475_v24, 0.0  ;;  %v479_v29 = vpop.f32.mrb[3].mxu1 }
 0x21e   :  { %v482_v30 = vmax.f32 %v477_v26, 0.0 }
 0x21f   :  { %v483_v32 = vpack.c.bf16 %v481_v28, %v481_v28 }
 0x220   :  { %v484_v31 = vpack.c.bf16 %v482_v30, %v482_v30 }
 0x222   :  { %652 = vmatprep.mubr.bf16.mxu0 %v484_v31 }
 0x223   :  { %653 = vmatmul.mubr.bf16.vlgmr.msra.gmra.mrb[4].mxu0 %v483_v32 }
 0x2f6   :  { %v761_v33 = vpop.f32.mrb[4].mxu0 }
 0x2f7   :  { %v762_v35 = vpop.f32.mrb[5].mxu0 }
 0x2f8   :  { %v763_v36 = vadd.f32 %v762_v35, %v761_v33  ;;  %v764_v37 = vpop.f32.mrb[6].mxu0 }
 0x2f9   :  { %v765_v38 = vpop.f32.mrb[7].mxu0 }
 0x2fa   :  { %v655_v39 = vadd.f32 %v763_v36, %v728_v34 }
 0x2fc   :  { %865 = vtanh.f32 %v655_v39 }
 0x306   :  { %v866_v40 = vpop.eup %865 }
 0x307   :  { %v661_v41 = vmul.f32 2.0, %v866_v40 }
 0x309   :  { %662 = vst [vmem:[#allocation10] sm:$0xff] %v661_v41 }
 0x30a   :  { %966 = shalt.err (!%p963_p8)
}
 0x30b   :  { %s967_s10 = scalar_lea.hbm %s1117_s7, 128 }
 0x30c   :  { %p968_p9 = scmp.ne.s32.totalorder %s1117_s7, %s967_s10  ;;  %p971_p10 = scmp.lt.u32.totalorder %s967_s10, %s1117_s7 }
 0x30e   :  { %p973_p11 = pnand %p971_p10, %p968_p9 }
 0x310   :  { %976 = shalt.err (!%p973_p11)
}
 0x311   :  { %672 = dma.vmem_to_hbm [thread:$0]  %s670_s30, 128, %s1117_s7, [#allocation4]  }
 0x312   :  { %983 = dma.done.wait [#allocation4], 128  }
 0x313   :  { %984 = vsyncadd [#allocation4], 4294967168 }
 0x314   :  { %676 = vsyncpa [#allocation3], 1 }
 0x315   :  { %677 = vsyncpa [#allocation6], 1 }
 0x316   :  { %678 = vsyncpa [#allocation9], 1 }
 0x317   :  { %679 = vsyncpa [#allocation4], 1 }

</bundles_post_ra>
